<compile_context>
chip_gen: v6e
topology: v6e:2x2x1
jax: 0.10.0
libtpu: 0.0.40
codegen_flags: <defaults>
</compile_context>

<pallas_src>
import functools
import math

import jax
import jax.numpy as jnp
import numpy as np
from jax.experimental import pallas as pl
from jax.experimental.pallas import tpu as pltpu


def _harmonic_kernel(x_ref, out_ref, *, omega0, n_harmonic, row_sub):
    # x_ref:   (tile, D)        rows of the flattened input (f32)
    # out_ref: (tile, 2*D*H)    [sin block | cos block] (f32)
    tile, d = x_ref.shape
    h = n_harmonic
    dh = d * h

    # ---- per-grid-step constants (tiny shapes, built once per grid step) ----
    # Feature-major one-hot expansion matrix: sel[k, j] = 1 iff j // H == k,
    # so dot(x, sel)[:, j] == x[:, j // H].  Built from iota compares only
    # (no vector integer div/mod needed).
    row_id = jax.lax.broadcasted_iota(jnp.int32, (d, dh), 0)
    col_id = jax.lax.broadcasted_iota(jnp.int32, (d, dh), 1)
    sel = jnp.where((col_id >= row_id * h) & (col_id < (row_id + 1) * h),
                    1.0, 0.0).astype(jnp.bfloat16)            # exact {0, 1}

    # freq[0, j] = omega0 * 2**(j % H); 2**(j % H) is built exactly via the
    # f32 exponent field, and multiplying f32(omega0) by a power of two is
    # exact, so this matches the host-side np.ldexp reference bit-for-bit.
    col = jax.lax.broadcasted_iota(jnp.int32, (1, dh), 1)
    h_idx = col
    for k in range(1, d):                      # j % H without vector mod
        h_idx = h_idx - jnp.where(col >= k * h, h, 0)
    pow2 = pltpu.bitcast((h_idx + 127) * jnp.int32(1 << 23), jnp.float32)
    # Sublane broadcast hoisted out of the sub-chunk loop.
    freq = jnp.broadcast_to(jnp.float32(omega0) * pow2, (row_sub, dh))

    # ---- vreg-sized sub-chunks: keep the elementwise chain in registers ----
    n_sub = tile // row_sub

    @pl.loop(0, n_sub)
    def _(s):
        r0 = pl.multiple_of(s * row_sub, row_sub)
        xs = x_ref[pl.ds(r0, row_sub), :]                     # (row_sub, D) f32
        # Exact 3-way bf16 split: hi + mid + lo == xs bit-for-bit (RNE splits
        # of a 24-bit mantissa into 3x8 bits), so the MXU one-hot expansion
        # reproduces xs exactly and the arguments below match the reference.
        hi = xs.astype(jnp.bfloat16)
        r1 = xs - hi.astype(jnp.float32)
        mid = r1.astype(jnp.bfloat16)
        lo = (r1 - mid.astype(jnp.float32)).astype(jnp.bfloat16)
        xe = (jnp.dot(hi, sel, preferred_element_type=jnp.float32)
              + jnp.dot(mid, sel, preferred_element_type=jnp.float32)
              + jnp.dot(lo, sel, preferred_element_type=jnp.float32))
        e = xe * freq                                         # (row_sub, D*H)
        # Two direct half-stores — no (row_sub, 2*D*H) concat temp in VMEM.
        # (The 180-lane offset of the cos half is unavoidable with the
        # [sin | cos] layout; this variant has the least VMEM ld/st traffic.)
        out_ref[pl.ds(r0, row_sub), pl.ds(0, dh)] = jnp.sin(e)
        out_ref[pl.ds(r0, row_sub), pl.ds(dh, dh)] = jnp.cos(e)


def _round_up(a, b):
    return ((a + b - 1) // b) * b


def harmonic_embedding(x, n_harmonic_functions=60, omega0=0.1, row_tile=1024):
    """x: jnp array [..., dim] -> [..., 2 * dim * n_harmonic_functions] (f32)."""
    x = x.astype(jnp.float32)
    *lead, dim = x.shape
    n_rows = math.prod(lead) if lead else 1
    dh = dim * n_harmonic_functions
    out_dim = 2 * dh

    if n_rows == 0:
        return jnp.zeros((*lead, out_dim), jnp.float32)

    x2d = x.reshape(n_rows, dim)

    # Row tile: large for output-write amortization, a multiple of 8 sublanes,
    # and capped so the grid has >= 2 steps whenever the input allows it
    # (v7x megacore sharding of the "parallel" axis).
    tile = min(int(row_tile), _round_up(n_rows, 8))
    if _round_up(n_rows, 8) > 8:
        tile = min(tile, _round_up((n_rows + 1) // 2, 8))
    tile = max(8, (tile // 8) * 8)
    if tile >= 64:
        tile = _round_up(tile, 64)       # align to the sub-chunk size
    sub = 64                              # vreg-sized sub-chunk (must divide tile)
    while tile % sub:
        sub //= 2

    # Ragged last tile: Pallas pads the final block read and discards the
    # out-of-bounds writes — pure recompute, no side effects keyed on row idx.
    grid = (pl.cdiv(n_rows, tile),)

    kernel = functools.partial(
        _harmonic_kernel, omega0=float(omega0),
        n_harmonic=int(n_harmonic_functions), row_sub=int(sub))

    out2d = pl.pallas_call(
        kernel,
        out_shape=jax.ShapeDtypeStruct((n_rows, out_dim), jnp.float32),
        grid_spec=pltpu.PrefetchScalarGridSpec(
            num_scalar_prefetch=0,
            grid=grid,
            in_specs=[pl.BlockSpec((tile, dim), lambda i: (i, 0))],
            out_specs=pl.BlockSpec((tile, out_dim), lambda i: (i, 0)),
        ),
        compiler_params=pltpu.CompilerParams(
            dimension_semantics=("parallel",)),
        cost_estimate=pl.CostEstimate(
            flops=6 * n_rows * dim * dh + n_rows * dh,
            transcendentals=2 * n_rows * dh,
            bytes_accessed=4 * n_rows * (dim + out_dim),
        ),
    )(x2d)

    return out2d.reshape(*lead, out_dim)


def harmonic_embedding_ref(x, n_harmonic_functions=60, omega0=0.1):
    """Pure-JAX reference mirroring the PyTorch forward.

    Frequencies are omega0 * 2**h, built with np.ldexp so the f32 value is
    exact (bit-identical to the kernel's exponent-field construction).
    """
    x = x.astype(jnp.float32)
    freqs = jnp.asarray(
        np.ldexp(np.float32(omega0),
                 np.arange(n_harmonic_functions, dtype=np.int32)
                 ).astype(np.float32))
    embed = (x[..., None] * freqs).reshape(*x.shape[:-1], -1)
    return jnp.concatenate([jnp.sin(embed), jnp.cos(embed)], axis=-1)


if __name__ == "__main__":
    n_harm = 60
    omega0 = 0.1

    # Small, forward-consistent shape: batch=2, 8 points per batch, dim=3.
    x = jax.random.normal(jax.random.PRNGKey(0), (2, 8, 3), dtype=jnp.float32)
    out = jax.block_until_ready(harmonic_embedding(x, n_harm, omega0))
    ref = harmonic_embedding_ref(x, n_harm, omega0)
    assert out.shape == (2, 8, 2 * 3 * n_harm), out.shape
    assert jnp.allclose(out, ref, atol=1e-5, rtol=1e-5), float(
        jnp.max(jnp.abs(out - ref)))

    # Multi-grid-step case with a ragged final row tile and >1 sub-chunk.
    x2 = jax.random.normal(jax.random.PRNGKey(1), (3, 100, 3), dtype=jnp.float32)
    out2 = jax.block_until_ready(
        harmonic_embedding(x2, n_harm, omega0, row_tile=128))
    ref2 = harmonic_embedding_ref(x2, n_harm, omega0)
    assert out2.shape == (3, 100, 2 * 3 * n_harm), out2.shape
    assert jnp.allclose(out2, ref2, atol=1e-5, rtol=1e-5), float(
        jnp.max(jnp.abs(out2 - ref2)))

    print("KERNEL_OK")
</pallas_src>

<mosaic_0001>
module attributes {stable_mosaic.version = 11 : i64} {
  func.func @_harmonic_kernel(%arg0: i32, %arg1: memref<8x3xf32, #tpu.memory_space<vmem>>, %arg2: memref<8x360xf32, #tpu.memory_space<vmem>>) attributes {dimension_semantics = [#tpu.dimension_semantics<parallel>], iteration_bounds = array<i64: 2>, scalar_prefetch = 0 : i64, scratch_operands = 0 : i64, tpu.core_type = #tpu.core_type<tc>, window_params = [{transform_indices = @transform_0, window_bounds = array<i64: 8, 3>}, {transform_indices = @transform_1, window_bounds = array<i64: 8, 360>}]} {
    %0 = tpu.iota {dimensions = array<i32: 0>} : vector<3x180xi32>
    %1 = tpu.iota {dimensions = array<i32: 1>} : vector<3x180xi32>
    %c60_i32 = arith.constant 60 : i32
    %2 = vector.broadcast %c60_i32 : i32 to vector<3x180xi32>
    %3 = arith.muli %0, %2 : vector<3x180xi32>
    %4 = arith.cmpi sge, %1, %3 : vector<3x180xi32>
    %c1_i32 = arith.constant 1 : i32
    %5 = vector.broadcast %c1_i32 : i32 to vector<3x180xi32>
    %6 = arith.addi %0, %5 : vector<3x180xi32>
    %c60_i32_0 = arith.constant 60 : i32
    %7 = vector.broadcast %c60_i32_0 : i32 to vector<3x180xi32>
    %8 = arith.muli %6, %7 : vector<3x180xi32>
    %9 = arith.cmpi slt, %1, %8 : vector<3x180xi32>
    %10 = arith.andi %4, %9 : vector<3x180xi1>
    %cst = arith.constant 1.000000e+00 : f32
    %cst_1 = arith.constant 0.000000e+00 : f32
    %11 = vector.broadcast %cst : f32 to vector<3x180xf32>
    %12 = vector.broadcast %cst_1 : f32 to vector<3x180xf32>
    %13 = arith.select %10, %11, %12 : vector<3x180xi1>, vector<3x180xf32>
    %14 = arith.truncf %13 : vector<3x180xf32> to vector<3x180xbf16>
    %15 = tpu.iota {dimensions = array<i32: 1>} : vector<1x180xi32>
    %c60_i32_2 = arith.constant 60 : i32
    %16 = vector.broadcast %c60_i32_2 : i32 to vector<1x180xi32>
    %17 = arith.cmpi sge, %15, %16 : vector<1x180xi32>
    %c60_i32_3 = arith.constant 60 : i32
    %c0_i32 = arith.constant 0 : i32
    %18 = vector.broadcast %c60_i32_3 : i32 to vector<1x180xi32>
    %19 = vector.broadcast %c0_i32 : i32 to vector<1x180xi32>
    %20 = arith.select %17, %18, %19 : vector<1x180xi1>, vector<1x180xi32>
    %21 = arith.subi %15, %20 : vector<1x180xi32>
    %c120_i32 = arith.constant 120 : i32
    %22 = vector.broadcast %c120_i32 : i32 to vector<1x180xi32>
    %23 = arith.cmpi sge, %15, %22 : vector<1x180xi32>
    %c60_i32_4 = arith.constant 60 : i32
    %c0_i32_5 = arith.constant 0 : i32
    %24 = vector.broadcast %c60_i32_4 : i32 to vector<1x180xi32>
    %25 = vector.broadcast %c0_i32_5 : i32 to vector<1x180xi32>
    %26 = arith.select %23, %24, %25 : vector<1x180xi1>, vector<1x180xi32>
    %27 = arith.subi %21, %26 : vector<1x180xi32>
    %c127_i32 = arith.constant 127 : i32
    %28 = vector.broadcast %c127_i32 : i32 to vector<1x180xi32>
    %29 = arith.addi %27, %28 : vector<1x180xi32>
    %c8388608_i32 = arith.constant 8388608 : i32
    %30 = vector.broadcast %c8388608_i32 : i32 to vector<1x180xi32>
    %31 = arith.muli %29, %30 : vector<1x180xi32>
    %32 = tpu.bitcast %31 : vector<1x180xi32> -> vector<1x180xf32>
    %cst_6 = arith.constant 1.000000e-01 : f32
    %33 = vector.broadcast %cst_6 : f32 to vector<1x180xf32>
    %34 = arith.mulf %33, %32 : vector<1x180xf32>
    %35 = vector.shape_cast %34 : vector<1x180xf32> to vector<1x180xf32>
    %36 = vector.broadcast %35 : vector<1x180xf32> to vector<8x180xf32>
    %c0_i32_7 = arith.constant 0 : i32
    %c1_i32_8 = arith.constant 1 : i32
    %37 = arith.muli %c0_i32_7, %c1_i32_8 : i32
    %c0_i32_9 = arith.constant 0 : i32
    %38 = arith.addi %c0_i32_9, %37 : i32
    %c8_i32 = arith.constant 8 : i32
    %39 = arith.muli %38, %c8_i32 : i32
    %40 = tpu.assume_multiple %39, 8 : i32
    %41 = arith.index_cast %40 : i32 to index
    %c0 = arith.constant 0 : index
    %42 = vector.load %arg1[%41, %c0] : memref<8x3xf32, #tpu.memory_space<vmem>>, vector<8x3xf32>
    %43 = arith.truncf %42 : vector<8x3xf32> to vector<8x3xbf16>
    %44 = arith.extf %43 : vector<8x3xbf16> to vector<8x3xf32>
    %45 = arith.subf %42, %44 : vector<8x3xf32>
    %46 = arith.truncf %45 : vector<8x3xf32> to vector<8x3xbf16>
    %47 = arith.extf %46 : vector<8x3xbf16> to vector<8x3xf32>
    %48 = arith.subf %45, %47 : vector<8x3xf32>
    %49 = arith.truncf %48 : vector<8x3xf32> to vector<8x3xbf16>
    %cst_10 = arith.constant dense<0.000000e+00> : vector<8x180xf32>
    %50 = tpu.matmul %43, %14, %cst_10 {dimension_numbers = #tpu.dot_dimension_numbers<[1], [0], [0], [1], [0, 0, 1, 1], [], []>} : vector<8x3xbf16>, vector<3x180xbf16>, vector<8x180xf32> -> vector<8x180xf32>
    %cst_11 = arith.constant dense<0.000000e+00> : vector<8x180xf32>
    %51 = tpu.matmul %46, %14, %cst_11 {dimension_numbers = #tpu.dot_dimension_numbers<[1], [0], [0], [1], [0, 0, 1, 1], [], []>} : vector<8x3xbf16>, vector<3x180xbf16>, vector<8x180xf32> -> vector<8x180xf32>
    %52 = arith.addf %50, %51 : vector<8x180xf32>
    %cst_12 = arith.constant dense<0.000000e+00> : vector<8x180xf32>
    %53 = tpu.matmul %49, %14, %cst_12 {dimension_numbers = #tpu.dot_dimension_numbers<[1], [0], [0], [1], [0, 0, 1, 1], [], []>} : vector<8x3xbf16>, vector<3x180xbf16>, vector<8x180xf32> -> vector<8x180xf32>
    %54 = arith.addf %52, %53 : vector<8x180xf32>
    %55 = arith.mulf %54, %36 : vector<8x180xf32>
    %56 = math.sin %55 : vector<8x180xf32>
    %57 = arith.index_cast %40 : i32 to index
    %c0_13 = arith.constant 0 : index
    %58 = vector.load %arg2[%57, %c0_13] : memref<8x360xf32, #tpu.memory_space<vmem>>, vector<8x180xf32>
    tpu.vector_store %arg2[%57, %c0_13], %56 {strides = array<i32>} : memref<8x360xf32, #tpu.memory_space<vmem>>, vector<8x180xf32>,
    %59 = math.cos %55 : vector<8x180xf32>
    %60 = arith.index_cast %40 : i32 to index
    %c180 = arith.constant 180 : index
    %61 = vector.load %arg2[%60, %c180] : memref<8x360xf32, #tpu.memory_space<vmem>>, vector<8x180xf32>
    tpu.vector_store %arg2[%60, %c180], %59 {strides = array<i32>} : memref<8x360xf32, #tpu.memory_space<vmem>>, vector<8x180xf32>,
    %c1_i32_14 = arith.constant 1 : i32
    return
  }
  func.func @transform_0(%arg0: i32) -> (i32, i32) {
    %c0_i32 = arith.constant 0 : i32
    %c0_i32_0 = arith.constant 0 : i32
    return %arg0, %c0_i32 : i32, i32
  }
  func.func @transform_1(%arg0: i32) -> (i32, i32) {
    %c0_i32 = arith.constant 0 : i32
    %c0_i32_0 = arith.constant 0 : i32
    return %arg0, %c0_i32 : i32, i32
  }
}

</mosaic_0001>

<bundles_post_ra>
// kernel: tpu_custom_call.1
= control target key start
LH: loop header
LB: loop body
LE: loop exit
PB: predicated region body
PF: predicated region fallthrough
CT: control target
= control target key end

     0   :  { %6 = vsyncpa [#allocation3], 0  ;;  %s1200_s0 = inlined_call_operand.vmem [shape: f32[16,3], index: 0, kind: input, shape index: {}]   ;;  %s1201_s1 = inlined_call_operand.hbm [shape: f32[16,360], index: 1, kind: output, shape index: {}]  }
   0x1   :  { %8 = vsyncpa [#allocation3 + $0x1], 0  ;;  %s992_s6 = smov 0   ;;  %s994_s7 = smov 0  }
   0x2   :  { %s996_s8 = smov 0   ;;  %s998_s9 = smov 0  }
   0x3 LB: > { %s1013_s10 = sadd.s32 4294967295, %s969_s9   ;;  %s813_s11 = sadd.s32 4294967294, %s969_s9   ;;  %s969_s9 = sphi %s998_s9, %s1207_s9   ;;  %s965_s8 = sphi %s996_s8, %s1206_s8   ;;  %s961_s7 = sphi %s994_s7, %s1205_s7   ;;  %s957_s6 = sphi %s992_s6, %s1204_s6  }
   0x4   : > { %s1017_s12 = sadd.s32 1, %s969_s9   ;;  %s47_s13 = sadd.s32 1, %s965_s8 }
   0x5   : > { %s44_s14 = ssub.s32 %s969_s9, %s1017_s12  ;;  %p57_p0 = scmp.ne.s32.totalorder %s965_s8, %s961_s7 }
   0x6   : > { %p45_p1 = scmp.eq.s32.totalorder %s44_s14, 0  ;;  %p58_p2 = scmp.eq.s32.totalorder %s1013_s10, 1 }
   0x7   : > { %p63_p3 = scmp.ne.s32.totalorder %s961_s7, %s957_s6  ;;  %p64_p4 = scmp.eq.s32.totalorder %s813_s11, 1 }
   0x8   : > { %s1028_s15 = scalar_select %p45_p1, %s965_s8, %s47_s13  }
   0x9   : > { %p1030_p5 = por %p58_p2, %p57_p0  ;;  %p1034_p6 = por %p64_p4, %p63_p3 }
   0xa   : > { %p816_p7 = scmp.ge.s32.totalorder %s969_s9, 1  ;;  %p89_p8 = scmp.lt.s32.totalorder %s969_s9, 3 }
   0xc   : > { %p90_p9 = pnand %p816_p7, %p89_p8 }
   0xd   : > { %p108_p10 = scmp.lt.s32.totalorder (!%p90_p9), %s1013_s10, 1  ;;  %s105_s23 = sand.u32 (!%p90_p9), 1, %s961_s7  }
   0xe   : > { %93 = sbr.rel (%p90_p9) target bundleno = 465 (0x1d1), region = 24  ;;  %s980_s25 = smov (!%p90_p9), 52  }
   0xf   : > { %s842_s24 = smul.u32 (!%p90_p9), 24, %s105_s23  ;;  %s740_s3 = scalar_lea.sflag (!%p90_p9), [#allocation3], %s105_s23 }
  0x10   : > { %s851_s27 = smul.u32 (!%p90_p9), 384, %s1013_s10  ;;  %s981_s5 = smov (!%p90_p9), [#allocation2]  }
  0x11   : > { %s1149_s26 = scalar_lea.vmem (!%p90_p9), [#allocation2], %s842_s24 }
  0x12   : > { %s754_s28 = sshll.u32 (!%p90_p9), %s1149_s26, 4  ;;  %s1161_s2 = scalar_lea.hbm (!%p90_p9), %s1201_s1, %s851_s27  ;;  %s755_s28 = int_to_ptr.vmem [resolvable:$true] %s754_s28 }
  0x13   : > { %v113_v0 = vlaneseq  ;;  %v971_v3 = vmov 0   ;;  %s109_s18 = scalar_select %p108_p10, %s1013_s10, 1  ;;  %vm163_vm0 = vcmask 1040384   ;;  %vm164_vm2 = vcmask 1041408  }
  0x14   : > { %205 = vmatprep.mubr.bf16.mxu0 %v971_v3  ;;  %249 = vmatprep.mubr.bf16.mxu1 %v971_v3  ;;  %v972_v9 = vmov 65535   ;;  %v973_v13 = vmov 0.0   ;;  %vm159_vm8 = vcmask 23552   ;;  %s909_s4 = scalar_lea.vmem %s755_s28, 384  ;;  %s913_s10 = sshll.u32 %s981_s5, 4  ;;  %s914_s10 = int_to_ptr.vmem [resolvable:$false] %s913_s10 }
  0x15   : > { %v114_v1 = vshrl.u32 %v113_v0, 7  ;;  %v116_v2 = vand.u32 127, %v113_v0  ;;  %s817_s19 = sshll.u32 %s109_s18, 3  ;;  %v165_v10 = vsel %vm163_vm0, 4294967295, %v972_v9  ;;  %p910_p11 = scmp.ne.s32.totalorder %s755_s28, %s909_s4 }
  0x16   : > { %s111_s22 = scalar_lea.vmem %s1200_s0, %s817_s19  ;;  %v166_v15 = vsel %vm164_vm2, %v165_v10, 0  ;;  %s915_s11 = scalar_lea.vmem %s914_s10, 768 }
  0x17   : > { %v117_v4 = vadd.s32 128, %v116_v2  ;;  %v118_v5 = vmul.u32 60, %v114_v1  ;;  %v121_v6 = vadd.s32 1, %v114_v1  ;;  %v151_v8 = vld [vmem:[%s111_s22] sm:$0xff]  ;;  %vm131_vm9 = vcmp.ge.s32.totalorder %v116_v2, 60  ;;  %p911_p12 = pnand %p910_p11, %p1030_p5  ;;  %p916_p0 = scmp.lt.s32.totalorder %s755_s28, %s914_s10 }
  0x18   : > { %v152_v11 = vpack.c.bf16 %v151_v8, %v151_v8  ;;  %v133_v26 = vsel %vm131_vm9, 60, %v971_v3  ;;  %vm137_vm10 = vcmp.ge.s32.totalorder %v116_v2, 120  ;;  %p917_p1 = scmp.lt.s32.totalorder %s915_s11, %s909_s4 }
  0x19   : > { %vm120_vm1 = vcmp.ge.s32.totalorder %v117_v4, %v118_v5  ;;  %v122_v7 = vmul.u32 60, %v121_v6  ;;  %vm119_vm3 = vcmp.ge.s32.totalorder %v116_v2, %v118_v5  ;;  %v135_v27 = vsub.s32 %v116_v2, %v133_v26  ;;  %p912_p13 = pneg %p911_p12 }
  0x1a   : > { %v153_v12 = vunpack.c.l.bf16 %v152_v11  ;;  %v139_v28 = vsel %vm137_vm10, 60, %v971_v3  ;;  %v818_v29 = vadd.s32 4294967236, %v117_v4  ;;  %v978_v26 = vmov 920167782   ;;  %p918_p2 = por %p917_p1, %p916_p0 }
  0x1b   : > { %vm124_vm4 = vcmp.lt.s32.totalorder %v117_v4, %v122_v7  ;;  %vm123_vm5 = vcmp.lt.s32.totalorder %v116_v2, %v122_v7  ;;  %v141_v30 = vsub.s32 %v135_v27, %v139_v28 }
  0x1c   : > { %vm126_vm6 = vmand %vm120_vm1, %vm124_vm4  ;;  %v154_v18 = vsub.f32 %v151_v8, %v153_v12  ;;  %v819_v31 = vadd.s32 4294967236, %v818_v29  ;;  %v979_v29 = vmov 1326507024   ;;  %p919_p3 = pnand %p918_p2, %p912_p13 }
  0x1d   : > { %v128_v14 = vsel %vm126_vm6, 1.0, %v973_v13  ;;  %vm125_vm7 = vmand %vm119_vm3, %vm123_vm5  ;;  %v143_v32 = vadd.s32 127, %v141_v30 }
  0x1e   : > { %v130_v16 = vpack.c.bf16 %v128_v14, %v128_v14  ;;  %v127_v17 = vsel %vm125_vm7, 1.0, %v973_v13  ;;  %v155_v21 = vpack.c.bf16 %v154_v18, %v154_v18  ;;  %v144_v35 = vadd.s32 127, %v819_v31 }
  0x1f   : > { %v129_v19 = vpack.c.bf16 %v127_v17, %v127_v17  ;;  %v145_v38 = vmul.u32 8388608, %v143_v32  ;;  %v974_v13 = vmov 683565275   ;;  %v975_v17 = vmov 2475754826  }
  0x20   : > { %v171_v20 = vand.u32 %v166_v15, %v130_v16  ;;  %v156_v23 = vunpack.c.l.bf16 %v155_v21  ;;  %v146_v41 = vmul.u32 8388608, %v144_v35 }
  0x21   : > { %v168_v22 = vand.u32 %v166_v15, %v129_v19  ;;  %v149_v45 = vmul.f32 0.1, %v145_v38  ;;  %v976_v19 = vmov 2131351028  }
  0x22   : > { %187 = vmatprep.subr.bf16.mxu0 %v171_v20  ;;  %231 = vmatprep.subr.bf16.mxu1 %v171_v20  ;;  %v157_v24 = vsub.f32 %v154_v18, %v156_v23  ;;  %v150_v49 = vmul.f32 0.1, %v146_v41 }
  0x23   : > { %188 = vmatpush1.bf16.msra.mxu0 %v168_v22  ;;  %232 = vmatpush1.bf16.msra.mxu1 %v168_v22 }
  0x24   : > { %275 = vmatprep.subr.bf16.mxu0 %v171_v20  ;;  %v158_v25 = vpack.c.bf16 %v157_v24, %v157_v24 }
  0x26   : > { %820 = vmatmul.mubr.msk.bf16.vlgmr.msra.gmra.mxu0 %vm159_vm8, %v155_v21  ;;  %821 = vmatmul.mubr.msk.bf16.vlgmr.msra.gmra.mxu1 %vm159_vm8, %v152_v11  ;;  %v977_v21 = vmov 2102212464  }
  0x27   : > { %276 = vmatpush1.bf16.msra.mxu0 %v168_v22  ;;  %293 = vmatprep.mubr.bf16.mxu0 %v971_v3 }
  0x2e   : > { %822 = vmatmul.mubr.msk.bf16.vlgmr.msra.gmra.mxu0 %vm159_vm8, %v158_v25 }
  0xe6   : > { %v207_v33 = vpop.f32.mrf.mxu0  ;;  %v251_v34 = vpop.f32.mrf.mxu1 }
  0xe7   : > { %v252_v44 = vadd.f32 %v251_v34, %v207_v33 }
  0xe8   : > { %v209_v36 = vpop.f32.mrf.mxu0  ;;  %v253_v37 = vpop.f32.mrf.mxu1 }
  0xe9   : > { %v254_v47 = vadd.f32 %v253_v37, %v209_v36 }
  0xea   : > { %v211_v39 = vpop.f32.mrf.mxu0  ;;  %v255_v40 = vpop.f32.mrf.mxu1 }
  0xec   : > { %v212_v42 = vpop.f32.mrf.mxu0  ;;  %v256_v43 = vpop.f32.mrf.mxu1 }
  0xee   : > { %v295_v46 = vpop.f32.mrf.mxu0 }
  0xef   : > { %v302_v48 = vadd.f32 %v295_v46, %v252_v44 }
  0xf0   : > { %v297_v50 = vpop.f32.mrf.mxu0 }
  0xf1   : > { %v1045_v51 = vmul.f32 %v302_v48, %v149_v45  ;;  %v303_v52 = vadd.f32 %v297_v50, %v254_v47 }
  0xf2   : > { %v299_v53 = vpop.f32.mrf.mxu0 }
  0xf3   : > { %v309_v54 = vand.u32 2139095040, %v1045_v51  ;;  %v1048_v55 = vmul.f32 %v303_v52, %v150_v49  ;;  %v306_v56 = vand.u32 2147483647, %v1045_v51  ;;  %vm308_vm9 = vcmp.lt.s32.totalorder %v1045_v51, 0 }
  0xf4   : > { %v300_v57 = vpop.f32.mrf.mxu0 }
  0xf5   : > { %v310_v58 = vshrl.u32 %v309_v54, 23  ;;  %v413_v59 = vand.u32 2139095040, %v1048_v55  ;;  %v313_v62 = vand.u32 8388607, %v306_v56  ;;  %v410_v63 = vand.u32 2147483647, %v1048_v55 }
  0xf6   : > { %vm307_vm10 = vcmp.le.f32.partialorder %v306_v56, 0.7853982 }
  0xf7   : > { %v823_v60 = vadd.s32 4294967169, %v310_v58  ;;  %v414_v61 = vshrl.u32 %v413_v59, 23  ;;  %v314_v3 = vor.u32 8388608, %v313_v62  ;;  %v417_v5 = vand.u32 8388607, %v410_v63 }
  0xf9   : > { %v316_v0 = vadd.s32 1, %v823_v60  ;;  %v827_v1 = vadd.s32 4294967169, %v414_v61  ;;  %v1059_v10 = vshll.u32 %v314_v3, 8  ;;  %v418_v15 = vor.u32 8388608, %v417_v5 }
  0xfb   : > { %vm317_vm11 = vcmp.gt.s32.totalorder %v316_v0, 0  ;;  %v420_v2 = vadd.s32 1, %v827_v1  ;;  %v1071_v40 = vshll.u32 %v418_v15, 8 }
  0xfc   : > { %v318_v4 = vsel %vm317_vm11, %v316_v0, 0  ;;  %vm412_vm11 = vcmp.lt.s32.totalorder %v1048_v55, 0 }
  0xfd   : > { %v320_v6 = vand.u32 31, %v318_v4  ;;  %vm421_vm12 = vcmp.gt.s32.totalorder %v420_v2, 0  ;;  %v319_v11 = vshrl.u32 %v318_v4, 5 }
  0xfe   : > { %v422_v7 = vsel %vm421_vm12, %v420_v2, 0  ;;  %vm411_vm12 = vcmp.le.f32.partialorder %v410_v63, 0.7853982 }
  0xff   : > { %v321_v8 = vsub.s32 32, %v320_v6  ;;  %v1057_v9 = vand.u32 31, %v422_v7  ;;  %v1061_v12 = vshrl.u32 %v422_v7, 5  ;;  %v323_v14 = vshll.u32 %v974_v13, %v320_v6 }
 0x100   : > { %v326_v18 = vshll.u32 %v975_v17, %v320_v6  ;;  %v329_v20 = vshll.u32 %v976_v19, %v320_v6  ;;  %v332_v22 = vshll.u32 %v977_v21, %v320_v6  ;;  %v335_v27 = vshll.u32 %v978_v26, %v320_v6 }
 0x101   : > { %v1065_v16 = vsub.s32 32, %v1057_v9  ;;  %v324_v23 = vshrl.u32 %v975_v17, %v321_v8  ;;  %v327_v24 = vshrl.u32 %v976_v19, %v321_v8  ;;  %v330_v25 = vshrl.u32 %v977_v21, %v321_v8 }
 0x102   : > { %v333_v31 = vshrl.u32 %v978_v26, %v321_v8  ;;  %v336_v32 = vshrl.u32 %v979_v29, %v321_v8  ;;  %v439_v33 = vshll.u32 %v978_v26, %v1057_v9  ;;  %v436_v37 = vshll.u32 %v977_v21, %v1057_v9 }
 0x103   : > { %v437_v28 = vshrl.u32 %v978_v26, %v1065_v16  ;;  %v440_v30 = vshrl.u32 %v979_v29, %v1065_v16  ;;  %v325_v34 = vor.u32 %v324_v23, %v323_v14  ;;  %v328_v35 = vor.u32 %v327_v24, %v326_v18 }
 0x104   : > { %v331_v36 = vor.u32 %v330_v25, %v329_v20  ;;  %v334_v38 = vor.u32 %v333_v31, %v332_v22  ;;  %v337_v39 = vor.u32 %v336_v32, %v335_v27  ;;  %vm445_vm13 = vcmp.lt.s32.totalorder %v1061_v12, 4 }
 0x105   : > { %v441_v41 = vor.u32 %v440_v30, %v439_v33  ;;  %vm338_vm14 = vcmp.lt.s32.totalorder %v319_v11, 1  ;;  %vm341_vm15 = vcmp.lt.s32.totalorder %v319_v11, 4  ;;  %v438_v42 = vor.u32 %v437_v28, %v436_v37 }
 0x106   : > { %v322_v43 = vshrl.u32 %v974_v13, %v321_v8  ;;  %v343_v44 = vsel %vm341_vm15, %v331_v36, 2102212464  ;;  %v346_v45 = vsel %vm338_vm14, %v325_v34, %v328_v35  ;;  %vm340_vm0 = vcmp.lt.s32.totalorder %v319_v11, 3 }
 0x107   : > { %v347_v46 = vsel %vm341_vm15, %v334_v38, 920167782  ;;  %v350_v47 = vsel %vm338_vm14, %v328_v35, %v331_v36  ;;  %v351_v48 = vsel %vm341_vm15, %v337_v39, 1326507024  ;;  %vm339_vm1 = vcmp.lt.s32.totalorder %v319_v11, 2 }
 0x108   : > { %v342_v49 = vsel %vm338_vm14, %v322_v43, %v325_v34  ;;  %v348_v50 = vsel %vm340_vm0, %v331_v36, %v347_v46  ;;  %v352_v52 = vsel %vm340_vm0, %v334_v38, %v351_v48  ;;  %v455_v53 = vsel %vm445_vm13, %v441_v41, 1326507024 }
 0x109   : > { %v344_v54 = vsel %vm340_vm0, %v328_v35, %v343_v44  ;;  %v349_v57 = vsel %vm339_vm1, %v346_v45, %v348_v50  ;;  %v353_v58 = vsel %vm339_vm1, %v350_v47, %v352_v52  ;;  %v427_v0 = vshll.u32 %v974_v13, %v1057_v9 }
 0x10a   : > { %v1078_v59 = vmul.u32.u64.low %v1059_v10, %v353_v58  ;;  %v1079_v60 = vmul.u32.u64.high %v1059_v10, %v353_v58, %v1078_v59  ;;  %v1082_v61 = vmul.u32.u64.low %v1059_v10, %v349_v57  ;;  %v1083_v62 = vmul.u32.u64.high %v1059_v10, %v349_v57, %v1082_v61 }
 0x10b   : > { %v428_v1 = vshrl.u32 %v975_v17, %v1065_v16  ;;  %v430_v2 = vshll.u32 %v975_v17, %v1057_v9  ;;  %v431_v3 = vshrl.u32 %v976_v19, %v1065_v16  ;;  %v451_v4 = vsel %vm445_vm13, %v438_v42, 920167782 }
 0x10c   : > { %v345_v5 = vsel %vm339_vm1, %v342_v49, %v344_v54  ;;  %v433_v6 = vshll.u32 %v976_v19, %v1057_v9  ;;  %v434_v7 = vshrl.u32 %v977_v21, %v1065_v16  ;;  %vm442_vm2 = vcmp.lt.s32.totalorder %v1061_v12, 1 }
 0x10d   : > { %v429_v8 = vor.u32 %v428_v1, %v427_v0  ;;  %v432_v11 = vor.u32 %v431_v3, %v430_v2  ;;  %vm444_vm3 = vcmp.lt.s32.totalorder %v1061_v12, 3  ;;  %vm363_vm4 = vc.u32 %v1079_v60, %v1082_v61 }
 0x10e   : > { %v364_v14 = vadd.s32 1, %v1083_v62  ;;  %v435_v15 = vor.u32 %v434_v7, %v433_v6  ;;  %v456_v17 = vsel %vm444_vm3, %v438_v42, %v455_v53  ;;  %v361_v18 = vmul.u32 %v1059_v10, %v345_v5 }
 0x10f   : > { %v426_v9 = vshrl.u32 %v974_v13, %v1065_v16  ;;  %vm443_vm5 = vcmp.lt.s32.totalorder %v1061_v12, 2  ;;  %v450_v19 = vsel %vm442_vm2, %v429_v8, %v432_v11  ;;  %v362_v49 = vadd.s32 %v1082_v61, %v1079_v60 }
 0x110   : > { %v365_v20 = vsel %vm363_vm4, %v364_v14, %v1083_v62  ;;  %v447_v21 = vsel %vm445_vm13, %v435_v15, 2102212464  ;;  %v452_v22 = vsel %vm444_vm3, %v435_v15, %v451_v4  ;;  %v454_v23 = vsel %vm442_vm2, %v432_v11, %v435_v15 }
 0x111   : > { %v366_v10 = vadd.s32 %v365_v20, %v361_v18  ;;  %v453_v13 = vsel %vm443_vm5, %v450_v19, %v452_v22  ;;  %v457_v16 = vsel %vm443_vm5, %v454_v23, %v456_v17  ;;  %v446_v24 = vsel %vm442_vm2, %v426_v9, %v429_v8 }
 0x112   : > { %v448_v25 = vsel %vm444_vm3, %v432_v11, %v447_v21  ;;  %v1122_v26 = vmul.u32.u64.low %v1071_v40, %v457_v16  ;;  %v1123_v27 = vmul.u32.u64.high %v1071_v40, %v457_v16, %v1122_v26  ;;  %vm398_vm3 = vweird.f32 %v1045_v51 }
 0x113   : > { %v367_v28 = vadd.s32 536870912, %v366_v10  ;;  %v1126_v29 = vmul.u32.u64.low %v1071_v40, %v453_v13  ;;  %v1127_v30 = vmul.u32.u64.high %v1071_v40, %v453_v13, %v1126_v29  ;;  %v449_v32 = vsel %vm443_vm5, %v446_v24, %v448_v25 }
 0x114   : > { %v465_v35 = vmul.u32 %v1071_v40, %v449_v32 }
 0x115   : > { %v368_v31 = vshrl.u32 %v367_v28, 30  ;;  %vm467_vm6 = vc.u32 %v1123_v27, %v1126_v29  ;;  %v468_v34 = vadd.s32 1, %v1127_v30  ;;  %v466_v5 = vadd.s32 %v1126_v29, %v1123_v27 }
 0x117   : > { %v369_v33 = vshll.u32 %v368_v31, 30  ;;  %v469_v37 = vsel %vm467_vm6, %v468_v34, %v1127_v30  ;;  %v392_v15 = vsub.s32 4, %v368_v31  ;;  %vm518_vm6 = vcmask 424960  }
 0x118   : > { %v470_v38 = vadd.s32 %v469_v37, %v465_v35 }
 0x119   : > { %v370_v36 = vsub.s32 %v366_v10, %v369_v33  ;;  %v393_v21 = vsel %vm308_vm9, %v392_v15, %v368_v31 }
 0x11a   : > { %v471_v41 = vadd.s32 536870912, %v470_v38  ;;  %v395_v13 = vsel %vm307_vm10, 0, %v393_v21 }
 0x11b   : > { %v372_v39 = vsub.s32 0, %v370_v36  ;;  %v399_v25 = vadd.s32 3, %v395_v13  ;;  %v613_v29 = vand.u32 3, %v395_v13 }
 0x11c   : > { %v472_v43 = vshrl.u32 %v471_v41, 30 }
 0x11d   : > { %v824_v42 = vmin.u32 %v372_v39, %v370_v36  ;;  %v400_v28 = vand.u32 3, %v399_v25  ;;  %vm615_vm14 = vcmp.eq.s32.totalorder %v613_v29, 0  ;;  %vm618_vm15 = vcmp.eq.s32.totalorder %v613_v29, 2 }
 0x11e   : > { %v473_v45 = vshll.u32 %v472_v43, 30  ;;  %v496_v24 = vsub.s32 4, %v472_v43  ;;  %vm614_vm2 = vcmp.lt.s32.totalorder %v613_v29, 2 }
 0x11f   : > { %v374_v44 = vclz %v824_v42  ;;  %vm405_vm13 = vcmp.eq.s32.totalorder %v400_v28, 2  ;;  %vm402_vm0 = vcmp.eq.s32.totalorder %v400_v28, 0  ;;  %vm401_vm1 = vcmp.lt.s32.totalorder %v400_v28, 2 }
 0x120   : > { %v474_v12 = vsub.s32 %v470_v38, %v473_v45  ;;  %v497_v27 = vsel %vm412_vm11, %v496_v24, %v472_v43 }
 0x121   : > { %v825_v46 = vadd.s32 4294967294, %v374_v44  ;;  %v499_v31 = vsel %vm411_vm12, 0, %v497_v27 }
 0x122   : > { %v476_v48 = vsub.s32 0, %v474_v12  ;;  %v716_v45 = vand.u32 3, %v499_v31 }
 0x123   : > { %vm826_vm7 = vcmp.lt.s32.totalorder %v825_v46, 0 }
 0x124   : > { %v377_v47 = vsel %vm826_vm7, 0, %v825_v46  ;;  %v828_v40 = vmin.u32 %v476_v48, %v474_v12  ;;  %vm721_vm5 = vcmp.eq.s32.totalorder %v716_v45, 2 }
 0x125   : > { %v378_v50 = vsub.s32 32, %v377_v47  ;;  %v382_v52 = vsub.s32 4294967266, %v377_v47  ;;  %v379_v53 = vshll.u32 %v370_v36, %v377_v47  ;;  %v503_v36 = vadd.s32 3, %v499_v31 }
 0x126   : > { %v478_v58 = vclz %v828_v40 }
 0x127   : > { %v380_v54 = vshrl.u32 %v362_v49, %v378_v50  ;;  %v383_v57 = vadd.s32 127, %v382_v52  ;;  %v504_v44 = vand.u32 3, %v503_v36 }
 0x128   : > { %v829_v0 = vadd.s32 4294967294, %v478_v58 }
 0x129   : > { %v381_v59 = vor.u32 %v380_v54, %v379_v53  ;;  %v384_v62 = vshll.u32 %v383_v57, 23  ;;  %vm509_vm4 = vcmp.eq.s32.totalorder %v504_v44, 2  ;;  %vm506_vm7 = vcmp.eq.s32.totalorder %v504_v44, 0 }
 0x12a   : > { %vm830_vm8 = vcmp.lt.s32.totalorder %v829_v0, 0 }
 0x12b   : > { %v385_v1 = vor.u32 4788187, %v384_v62  ;;  %v388_v3 = vcvt.s32.f32 %v381_v59  ;;  %v481_v4 = vsel %vm830_vm8, 0, %v829_v0  ;;  %vm718_vm8 = vcmp.eq.s32.totalorder %v716_v45, 0 }
 0x12c   : > { %v482_v6 = vsub.s32 32, %v481_v4  ;;  %v486_v7 = vsub.s32 4294967266, %v481_v4  ;;  %v483_v61 = vshll.u32 %v474_v12, %v481_v4 }
 0x12d   : > { %v386_v2 = vand.u32 2147483647, %v385_v1 }
 0x12e   : > { %v484_v8 = vshrl.u32 %v466_v5, %v482_v6  ;;  %v487_v11 = vadd.s32 127, %v486_v7 }
 0x12f   : > { %v389_v60 = vmul.f32 %v388_v3, %v386_v2 }
 0x130   : > { %v485_v17 = vor.u32 %v484_v8, %v483_v61  ;;  %v488_v18 = vshll.u32 %v487_v11, 23 }
 0x131   : > { %v390_v14 = vxor.u32 2147483648, %v389_v60 }
 0x132   : > { %v489_v20 = vor.u32 4788187, %v488_v18  ;;  %v492_v23 = vcvt.s32.f32 %v485_v17 }
 0x133   : > { %v391_v9 = vsel %vm308_vm9, %v390_v14, %v389_v60  ;;  %vm505_vm9 = vcmp.lt.s32.totalorder %v504_v44, 2 }
 0x134   : > { %v394_v19 = vsel %vm307_vm10, %v1045_v51, %v391_v9  ;;  %v490_v22 = vand.u32 2147483647, %v489_v20  ;;  %vm717_vm10 = vcmp.lt.s32.totalorder %v716_v45, 2 }
 0x135   : > { %901 = vcosq.f32 %v394_v19 }
 0x136   : > { %903 = vsinq.f32 %v394_v19  ;;  %v493_v10 = vmul.f32 %v492_v23, %v490_v22 }
 0x138   : > { %v494_v16 = vxor.u32 2147483648, %v493_v10 }
 0x13a   : > { %v495_v56 = vsel %vm412_vm11, %v494_v16, %v493_v10  ;;  %vm502_vm11 = vweird.f32 %v1048_v55 }
 0x13b   : > { %v498_v26 = vsel %vm411_vm12, %v1048_v55, %v495_v56  ;;  %vm735_vm12 = vcmask 1047968  }
 0x13c   : > { %905 = vcosq.f32 %v498_v26 }
 0x13d   : > { %907 = vsinq.f32 %v498_v26 }
 0x142   : > { %v902_v30 = vpop.eup %901 }
 0x143   : > { %v904_v32 = vpop.eup %903  ;;  %v406_v33 = vxor.u32 2147483648, %v902_v30 }
 0x144   : > { %v403_v34 = vxor.u32 2147483648, %v904_v32 }
 0x145   : > { %v620_v63 = vsel %vm618_vm15, %v406_v33, %v904_v32  ;;  %v407_v35 = vsel %vm405_vm13, %v406_v33, %v904_v32  ;;  %vm737_vm13 = vcmask 850944  }
 0x146   : > { %v617_v37 = vsel %vm615_vm14, %v902_v30, %v403_v34  ;;  %v404_v38 = vsel %vm402_vm0, %v902_v30, %v403_v34 }
 0x147   : > { %v621_v39 = vsel %vm614_vm2, %v617_v37, %v620_v63  ;;  %v408_v41 = vsel %vm401_vm1, %v404_v38, %v407_v35 }
 0x148   : > { %v622_v42 = vsel %vm398_vm3, nan, %v621_v39  ;;  %v409_v43 = vsel %vm398_vm3, nan, %v408_v41 }
 0x149   : > { %728 = vrot.lane.b32.xlu0 %v622_v42, %s980_s25  ;;  %517 = vst [vmem:[%s1149_s26] sm:$0xff] %v409_v43  ;;  %v906_v46 = vpop.eup %905 }
 0x14a   : > { %v908_v12 = vpop.eup %907  ;;  %v510_v47 = vxor.u32 2147483648, %v906_v46 }
 0x14b   : > { %v507_v48 = vxor.u32 2147483648, %v908_v12 }
 0x14c   : > { %v723_v51 = vsel %vm721_vm5, %v510_v47, %v908_v12  ;;  %v511_v49 = vsel %vm509_vm4, %v510_v47, %v908_v12 }
 0x14d   : > { %v720_v50 = vsel %vm718_vm8, %v906_v46, %v507_v48  ;;  %v508_v52 = vsel %vm506_vm7, %v906_v46, %v507_v48 }
 0x14e   : > { %v724_v40 = vsel %vm717_vm10, %v720_v50, %v723_v51  ;;  %v512_v53 = vsel %vm505_vm9, %v508_v52, %v511_v49 }
 0x14f   : > { %v725_v54 = vsel %vm502_vm11, nan, %v724_v40  ;;  %v513_v57 = vsel %vm502_vm11, nan, %v512_v53 }
 0x150   : > { %730 = vrot.lane.b32.xlu0 %v725_v54, %s980_s25  ;;  %519 = vst.msk [vmem:[%s1149_s26 + $0x8] sm:$0xff] %vm518_vm6, %v513_v57 }
 0x1bb   : > { %v729_v58 = vpop.permute.xlu0 %728 }
 0x1bc   : > { %736 = vst.msk [vmem:[%s1149_s26 + $0x8] sm:$0xff] %vm735_vm12, %v729_v58 }
 0x1c2   : > { %v731_v59 = vpop.permute.xlu0 %730 }
 0x1c3   : > { %v732_v55 = vsel %vm518_vm6, %v729_v58, %v731_v59 }
 0x1c4   : > { %738 = vst.msk [vmem:[%s1149_s26 + $0x10] sm:$0xff] %vm737_vm13, %v732_v55 }
 0x1c5   : > { %922 = shalt.err (!%p919_p3)
}
 0x1c6   : > { %s923_s13 = scalar_lea.hbm %s1161_s2, 384  ;;  %s927_s19 = scalar_lea.hbm %s1201_s1, 768 }
 0x1c7   : > { %p924_p4 = scmp.ne.s32.totalorder %s1161_s2, %s923_s13  ;;  %p928_p9 = scmp.lt.s32.totalorder %s1161_s2, %s1201_s1 }
 0x1c8   : > { %p929_p10 = scmp.lt.s32.totalorder %s927_s19, %s923_s13 }
 0x1c9   : > { %p925_p7 = pnand %p924_p4, %p1030_p5 }
 0x1ca   : > { %p930_p11 = por %p929_p10, %p928_p9 }
 0x1cb   : > { %p926_p8 = pneg %p925_p7 }
 0x1cd   : > { %p931_p12 = pnand %p930_p11, %p926_p8 }
 0x1cf   : > { %934 = shalt.err (!%p931_p12)
}
 0x1d0   : > { %852 = dma.vmem_to_hbm [thread:$0]  (%p1030_p5), %s755_s28, 384, %s1161_s2, %s740_s3  }
 0x1d1 PF: > { %p858_p13 = scmp.ge.s32.totalorder %s969_s9, 2  ;;  %s766_s22 = sand.u32 1, %s957_s6  }
 0x1d2   : > { %s767_s23 = scalar_lea.sflag [#allocation3], %s766_s22 }
 0x1d3   : > { %p855_p0 = pnand %p858_p13, %p1034_p6 }
 0x1d5   : > { %p856_p1 = pneg %p855_p0 }
 0x1d7   : > { %952 = dma.done.wait (%p856_p1), %s767_s23, 384  }
 0x1d8   : > { %954 = vsyncadd (%p856_p1), %s767_s23, 4294966912  ;;  %p11_p2 = scmp.ge.s32.totalorder %s1017_s12, 4   ;;  %s1204_s6 = smov %s961_s7 }
 0x1d9   : > { %s1205_s7 = smov %s965_s8  ;;  %s1206_s8 = smov %s1028_s15 }
 0x1da   : > { %s1207_s9 = smov %s1017_s12  ;;  %13 = sbr.rel (!%p11_p2) target bundleno = 3 (0x3), region = 60 }
 0x1df   :  { %772 = vsyncpa [#allocation3], 1 }
 0x1e0   :  { %774 = vsyncpa [#allocation3 + $0x1], 1 }

</bundles_post_ra>
